<compile_context>
chip_gen: v5e
topology: v5e:2x2
jax: 0.10.0
libtpu: 0.0.40
codegen_flags: <defaults>
</compile_context>

<pallas_src>
import jax
import jax.numpy as jnp
from jax.experimental import pallas as pl
from jax.experimental.pallas import tpu as pltpu


def _tdf_kernel(x_ref, w1_ref, w2_ref, bn_ref, o_ref):
    # x_ref: [TM, F1]   w1_ref: [F1, BN]   w2_ref: [BN, F2]
    # bn_ref: [TM, 4] per-row (scale1, shift1, scale2, shift2)   o_ref: [TM, F2]
    p = bn_ref[...]
    s1 = p[:, 0:1]
    b1 = p[:, 1:2]
    s2 = p[:, 2:3]
    b2 = p[:, 3:4]

    w2 = w2_ref[...]
    h = jnp.dot(x_ref[...], w1_ref[...], preferred_element_type=jnp.float32)
    h = jnp.maximum(h * s1 + b1, 0.0)                       # BN (eval) + ReLU
    y = jnp.dot(h.astype(w2.dtype), w2, preferred_element_type=jnp.float32)
    o_ref[...] = jnp.maximum(y * s2 + b2, 0.0).astype(o_ref.dtype)  # BN (eval) + ReLU


def tdf_f1_to_f2(x, w1, w2, scale1, shift1, scale2, shift2, *, row_tile=None):
    """x: [B, C, T, F1]. Returns [B, C, T, F2] in x.dtype."""
    B, C, T, F1 = x.shape
    BN = w1.shape[1]
    F2 = w2.shape[1]
    rows = B * C * T

    x_bytes = x.dtype.itemsize
    w_bytes = w1.dtype.itemsize

    # Free reshape (contiguous flatten) -- no HBM data movement.
    x2 = x.reshape(rows, F1)

    # Per-row BN parameters [rows, 4]; tiny (16 B/row) relative to the x/out streams.
    bn_rows = jnp.stack(
        [jnp.broadcast_to(v.astype(jnp.float32)[None, :, None], (B, C, T)).reshape(rows)
         for v in (scale1, shift1, scale2, shift2)],
        axis=-1,
    )

    # Generation-aware VMEM sizing (v7x: 64 MiB, v5e/v6e: 128 MiB physical).
    try:
        vmem_cap = int(pltpu.get_tpu_info().vmem_capacity_bytes)
    except Exception:
        vmem_cap = 64 * 1024 * 1024  # conservative fallback (v7x per-core VMEM)
    vmem_limit = vmem_cap // 2

    if row_tile is None:
        vmem_budget = vmem_cap // 4  # headroom for double-buffering + compiler scratch
        per_row = 2 * (F1 * x_bytes + F2 * x_bytes + 4 * 4) + BN * 4   # dbl-buf x/out/bn + h
        fixed = 2 * (F1 * BN + BN * F2) * w_bytes                      # resident weights
        tm = max(8, (vmem_budget - fixed) // per_row)
        # Cap so the [TM, BN] f32 intermediate does not blow the vreg file.
        tm = min(tm, 256 if BN >= 128 else 512)
        tm = max(8, (tm // 8) * 8)
        row_tile = rows if rows <= tm else tm

    grid = (pl.cdiv(rows, row_tile),)

    flops = 2 * rows * (F1 * BN + BN * F2)
    bytes_accessed = (rows * (F1 + F2) * x_bytes
                      + (F1 * BN + BN * F2) * w_bytes
                      + rows * 4 * 4)

    out2 = pl.pallas_call(
        _tdf_kernel,
        out_shape=jax.ShapeDtypeStruct((rows, F2), x.dtype),
        grid=grid,
        in_specs=[
            pl.BlockSpec((row_tile, F1), lambda i: (i, 0)),   # x rows (pipelined)
            pl.BlockSpec((F1, BN), lambda i: (0, 0)),         # w1 (resident)
            pl.BlockSpec((BN, F2), lambda i: (0, 0)),         # w2 (resident)
            pl.BlockSpec((row_tile, 4), lambda i: (i, 0)),    # per-row BN params
        ],
        out_specs=pl.BlockSpec((row_tile, F2), lambda i: (i, 0)),
        compiler_params=pltpu.CompilerParams(
            dimension_semantics=("parallel",),
            vmem_limit_bytes=vmem_limit),
        cost_estimate=pl.CostEstimate(
            flops=flops, transcendentals=0, bytes_accessed=bytes_accessed),
    )(x2, w1, w2, bn_rows)

    # Free reshape back to native layout.
    return out2.reshape(B, C, T, F2)


def make_params(key, channels, f1, f2, bn_factor=16, min_bn_units=16):
    """Deterministic synthetic parameters matching the module's __init__ shapes."""
    bn_units = max(f2 // bn_factor, min_bn_units)
    ks = jax.random.split(key, 4)
    # nn.Linear(f1, bn_units, bias=False): weight [bn_units, f1]; y = x @ W^T.
    w1_t = jax.random.uniform(ks[0], (bn_units, f1), jnp.float32, -1.0, 1.0) / jnp.sqrt(f1)
    w2_t = jax.random.uniform(ks[1], (f2, bn_units), jnp.float32, -1.0, 1.0) / jnp.sqrt(bn_units)
    w1 = jnp.transpose(w1_t)   # [f1, bn_units]
    w2 = jnp.transpose(w2_t)   # [bn_units, f2]

    eps = 1e-5

    def bn_params(k):
        kg, kb, km, kv = jax.random.split(k, 4)
        gamma = 1.0 + 0.1 * jax.random.normal(kg, (channels,), jnp.float32)
        beta = 0.1 * jax.random.normal(kb, (channels,), jnp.float32)
        rmean = 0.1 * jax.random.normal(km, (channels,), jnp.float32)
        rvar = jnp.abs(1.0 + 0.1 * jax.random.normal(kv, (channels,), jnp.float32))
        scale = gamma / jnp.sqrt(rvar + eps)
        shift = beta - rmean * scale
        return scale, shift

    scale1, shift1 = bn_params(ks[2])
    scale2, shift2 = bn_params(ks[3])
    return w1, w2, scale1, shift1, scale2, shift2


def reference(x, w1, w2, scale1, shift1, scale2, shift2):
    # Pure-JAX reference of the same semantics (eval-mode BN).
    h = jnp.einsum("bctf,fk->bctk", x, w1)
    h = jnp.maximum(h * scale1[None, :, None, None] + shift1[None, :, None, None], 0.0)
    y = jnp.einsum("bctk,ko->bcto", h, w2)
    return jnp.maximum(y * scale2[None, :, None, None] + shift2[None, :, None, None], 0.0)


if __name__ == "__main__":
    B, C, T, F1, F2 = 2, 4, 16, 128, 128
    key = jax.random.PRNGKey(0)
    kx, kp = jax.random.split(key)
    x = jax.random.normal(kx, (B, C, T, F1), jnp.float32)

    params = make_params(kp, C, F1, F2, bn_factor=16, min_bn_units=16)
    ref = reference(x, *params)

    # Default (VMEM-sized) tiling: single full-row tile here.
    out = jax.block_until_ready(tdf_f1_to_f2(x, *params))
    assert out.shape == (B, C, T, F2)
    assert jnp.allclose(out, ref, atol=2e-3, rtol=2e-3), "mismatch vs reference"

    # Exercise multi-step row tiling including a ragged (masked) final tile.
    out_tiled = jax.block_until_ready(tdf_f1_to_f2(x, *params, row_tile=48))
    assert jnp.allclose(out_tiled, ref, atol=2e-3, rtol=2e-3), "mismatch vs reference (tiled)"

    print("KERNEL_OK")
</pallas_src>

<mosaic_0001>
module attributes {stable_mosaic.version = 11 : i64} {
  func.func @_tdf_kernel(%arg0: i32, %arg1: memref<128x128xf32, #tpu.memory_space<vmem>>, %arg2: memref<128x16xf32, #tpu.memory_space<vmem>>, %arg3: memref<16x128xf32, #tpu.memory_space<vmem>>, %arg4: memref<128x4xf32, #tpu.memory_space<vmem>>, %arg5: memref<128x128xf32, #tpu.memory_space<vmem>>) attributes {dimension_semantics = [#tpu.dimension_semantics<parallel>], iteration_bounds = array<i64: 1>, scalar_prefetch = 0 : i64, scratch_operands = 0 : i64, tpu.core_type = #tpu.core_type<tc>, window_params = [{transform_indices = @transform_0, window_bounds = array<i64: 128, 128>}, {pipeline_mode = #tpu.pipeline_mode<synchronous>, transform_indices = @transform_1, window_bounds = array<i64: 128, 16>}, {pipeline_mode = #tpu.pipeline_mode<synchronous>, transform_indices = @transform_2, window_bounds = array<i64: 16, 128>}, {transform_indices = @transform_3, window_bounds = array<i64: 128, 4>}, {transform_indices = @transform_4, window_bounds = array<i64: 128, 128>}]} {
    %c0 = arith.constant 0 : index
    %c0_0 = arith.constant 0 : index
    %0 = vector.load %arg4[%c0, %c0_0] : memref<128x4xf32, #tpu.memory_space<vmem>>, vector<128x4xf32>
    %1 = vector.extract_strided_slice %0 {offsets = [0, 0], sizes = [128, 1], strides = [1, 1]} : vector<128x4xf32> to vector<128x1xf32>
    %2 = vector.extract_strided_slice %0 {offsets = [0, 1], sizes = [128, 1], strides = [1, 1]} : vector<128x4xf32> to vector<128x1xf32>
    %3 = vector.extract_strided_slice %0 {offsets = [0, 2], sizes = [128, 1], strides = [1, 1]} : vector<128x4xf32> to vector<128x1xf32>
    %4 = vector.extract_strided_slice %0 {offsets = [0, 3], sizes = [128, 1], strides = [1, 1]} : vector<128x4xf32> to vector<128x1xf32>
    %c0_1 = arith.constant 0 : index
    %c0_2 = arith.constant 0 : index
    %5 = vector.load %arg3[%c0_1, %c0_2] : memref<16x128xf32, #tpu.memory_space<vmem>>, vector<16x128xf32>
    %c0_3 = arith.constant 0 : index
    %c0_4 = arith.constant 0 : index
    %6 = vector.load %arg1[%c0_3, %c0_4] : memref<128x128xf32, #tpu.memory_space<vmem>>, vector<128x128xf32>
    %c0_5 = arith.constant 0 : index
    %c0_6 = arith.constant 0 : index
    %7 = vector.load %arg2[%c0_5, %c0_6] : memref<128x16xf32, #tpu.memory_space<vmem>>, vector<128x16xf32>
    %cst = arith.constant dense<0.000000e+00> : vector<128x16xf32>
    %8 = tpu.matmul %6, %7, %cst {dimension_numbers = #tpu.dot_dimension_numbers<[1], [0], [0], [1], [0, 0, 1, 1], [], []>} : vector<128x128xf32>, vector<128x16xf32>, vector<128x16xf32> -> vector<128x16xf32>
    %9 = vector.broadcast %1 : vector<128x1xf32> to vector<128x16xf32>
    %10 = arith.mulf %8, %9 : vector<128x16xf32>
    %11 = vector.broadcast %2 : vector<128x1xf32> to vector<128x16xf32>
    %12 = arith.addf %10, %11 : vector<128x16xf32>
    %cst_7 = arith.constant 0.000000e+00 : f32
    %13 = vector.broadcast %cst_7 : f32 to vector<128x16xf32>
    %14 = arith.maximumf %12, %13 : vector<128x16xf32>
    %cst_8 = arith.constant dense<0.000000e+00> : vector<128x128xf32>
    %15 = tpu.matmul %14, %5, %cst_8 {dimension_numbers = #tpu.dot_dimension_numbers<[1], [0], [0], [1], [0, 0, 1, 1], [], []>} : vector<128x16xf32>, vector<16x128xf32>, vector<128x128xf32> -> vector<128x128xf32>
    %16 = vector.broadcast %3 : vector<128x1xf32> to vector<128x128xf32>
    %17 = arith.mulf %15, %16 : vector<128x128xf32>
    %18 = vector.broadcast %4 : vector<128x1xf32> to vector<128x128xf32>
    %19 = arith.addf %17, %18 : vector<128x128xf32>
    %cst_9 = arith.constant 0.000000e+00 : f32
    %20 = vector.broadcast %cst_9 : f32 to vector<128x128xf32>
    %21 = arith.maximumf %19, %20 : vector<128x128xf32>
    %c0_10 = arith.constant 0 : index
    %c0_11 = arith.constant 0 : index
    %22 = vector.load %arg5[%c0_10, %c0_11] : memref<128x128xf32, #tpu.memory_space<vmem>>, vector<128x128xf32>
    tpu.vector_store %arg5[%c0_10, %c0_11], %21 {strides = array<i32>} : memref<128x128xf32, #tpu.memory_space<vmem>>, vector<128x128xf32>,
    return
  }
  func.func @transform_0(%arg0: i32) -> (i32, i32) {
    %c0_i32 = arith.constant 0 : i32
    %c0_i32_0 = arith.constant 0 : i32
    return %arg0, %c0_i32 : i32, i32
  }
  func.func @transform_1(%arg0: i32) -> (i32, i32) {
    %c0_i32 = arith.constant 0 : i32
    %c0_i32_0 = arith.constant 0 : i32
    %c0_i32_1 = arith.constant 0 : i32
    return %c0_i32, %c0_i32_0 : i32, i32
  }
  func.func @transform_2(%arg0: i32) -> (i32, i32) {
    %c0_i32 = arith.constant 0 : i32
    %c0_i32_0 = arith.constant 0 : i32
    %c0_i32_1 = arith.constant 0 : i32
    return %c0_i32, %c0_i32_0 : i32, i32
  }
  func.func @transform_3(%arg0: i32) -> (i32, i32) {
    %c0_i32 = arith.constant 0 : i32
    %c0_i32_0 = arith.constant 0 : i32
    return %arg0, %c0_i32 : i32, i32
  }
  func.func @transform_4(%arg0: i32) -> (i32, i32) {
    %c0_i32 = arith.constant 0 : i32
    %c0_i32_0 = arith.constant 0 : i32
    return %arg0, %c0_i32 : i32, i32
  }
}

</mosaic_0001>

<bundles_post_ra>
// kernel: tpu_custom_call.1
= control target key start
LH: loop header
LB: loop body
LE: loop exit
PB: predicated region body
PF: predicated region fallthrough
CT: control target
= control target key end

     0   :  { %v744_v1 = vmov 0   ;;  %s1107_s0 = inlined_call_operand.vmem [shape: f32[128,128], index: 0, kind: input, shape index: {}]   ;;  %s1108_s1 = inlined_call_operand.vmem [shape: f32[128,16], index: 1, kind: input, shape index: {}]   ;;  %s1109_s2 = inlined_call_operand.vmem [shape: f32[16,128], index: 2, kind: input, shape index: {}]   ;;  %s1110_s3 = inlined_call_operand.vmem [shape: f32[128,4], index: 3, kind: input, shape index: {}]   ;;  %s1111_s4 = inlined_call_operand.hbm [shape: f32[128,128], index: 4, kind: output, shape index: {}]  }
   0x1   :  { %v67_v0 = vld [vmem:[%s1108_s1 + $0x78] sm:$0xff]  ;;  %708 = vset.pattern.permute.xlu2 %v744_v1  ;;  %707 = vset.pattern.permute.xlu1 %v744_v1  ;;  %v782_v2 = vld [vmem:[%s1110_s3 + $0x20] sm:$0xff]  ;;  %v787_v3 = vld [vmem:[%s1110_s3 + $0x10] sm:$0xff] }
   0x2   :  { %706 = vset.pattern.permute.xlu0 %v744_v1  ;;  %68 = vmatpush.msra.mxu0 %v67_v0  ;;  %v792_v4 = vld [vmem:[%s1110_s3] sm:$0xff]  ;;  %v66_v5 = vld [vmem:[%s1108_s1 + $0x70] sm:$0xff]  ;;  %v65_v6 = vld [vmem:[%s1108_s1 + $0x68] sm:$0xff] }
   0x3   :  { %665 = vmatpush.msra.mxu2 %v67_v0  ;;  %666 = vmatpush.msra.mxu3 %v67_v0  ;;  %v64_v7 = vld [vmem:[%s1108_s1 + $0x60] sm:$0xff]  ;;  %v63_v8 = vld [vmem:[%s1108_s1 + $0x58] sm:$0xff]  ;;  %v812_v9 = vld [vmem:[%s1110_s3 + $0x28] sm:$0xff] }
   0x4   :  { %155 = vperm.xlu2 %708, %v782_v2   ;;  %145 = vperm.xlu1 %707, %v787_v3   ;;  %v817_v10 = vld [vmem:[%s1110_s3 + $0x18] sm:$0xff]  ;;  %v822_v11 = vld [vmem:[%s1110_s3 + $0x8] sm:$0xff]  ;;  %v62_v12 = vld [vmem:[%s1108_s1 + $0x50] sm:$0xff] }
   0x5   :  { %135 = vperm.xlu0 %706, %v792_v4   ;;  %69 = vmatpush.msra.mxu0 %v66_v5 }
   0x6   :  { %667 = vmatpush.msra.mxu2 %v66_v5  ;;  %668 = vmatpush.msra.mxu3 %v66_v5 }
   0x7   :  { %70 = vmatpush.msra.mxu0 %v65_v6 }
   0x8   :  { %669 = vmatpush.msra.mxu2 %v65_v6  ;;  %670 = vmatpush.msra.mxu3 %v65_v6 }
   0x9   :  { %71 = vmatpush.msra.mxu0 %v64_v7 }
   0xa   :  { %671 = vmatpush.msra.mxu2 %v64_v7  ;;  %672 = vmatpush.msra.mxu3 %v64_v7 }
   0xb   :  { %72 = vmatpush.msra.mxu0 %v63_v8 }
   0xc   :  { %9 = vsyncpa [#allocation3], 0  ;;  %673 = vmatpush.msra.mxu2 %v63_v8  ;;  %674 = vmatpush.msra.mxu3 %v63_v8  ;;  %v61_v13 = vld [vmem:[%s1108_s1 + $0x48] sm:$0xff]  ;;  %v60_v14 = vld [vmem:[%s1108_s1 + $0x40] sm:$0xff]  ;;  %v745_v38 = vmov 1   ;;  %v746_v50 = vmov 2  }
   0xd   :  { %160 = vperm.xlu2 %708, %v812_v9   ;;  %150 = vperm.xlu1 %707, %v817_v10   ;;  %v59_v15 = vld [vmem:[%s1108_s1 + $0x38] sm:$0xff]  ;;  %v842_v16 = vld [vmem:[%s1110_s3 + $0x40] sm:$0xff]  ;;  %v852_v18 = vld [vmem:[%s1110_s3 + $0x30] sm:$0xff]  ;;  %v747_v6 = vmov 3   ;;  %vm325_vm0 = vcmask 130048   ;;  %s637_s10 = sshll.u32 %s1111_s4, 4  ;;  %s638_s10 = int_to_ptr.hbm [resolvable:$true] %s637_s10 }
   0xe   :  { %140 = vperm.xlu0 %706, %v822_v11   ;;  %73 = vmatpush.msra.mxu0 %v62_v12  ;;  %v847_v17 = vld [vmem:[%s1110_s3 + $0x38] sm:$0xff]  ;;  %v58_v19 = vld [vmem:[%s1108_s1 + $0x30] sm:$0xff]  ;;  %v57_v20 = vld [vmem:[%s1108_s1 + $0x28] sm:$0xff]  ;;  %s749_s11 = smov 128   ;;  %s750_s12 = smov 8  }
   0xf   :  { %675 = vmatpush.msra.mxu2 %v62_v12  ;;  %676 = vmatpush.msra.mxu3 %v62_v12  ;;  %v56_v21 = vld [vmem:[%s1108_s1 + $0x20] sm:$0xff]  ;;  %v55_v22 = vld [vmem:[%s1108_s1 + $0x18] sm:$0xff]  ;;  %v877_v24 = vld [vmem:[%s1110_s3 + $0x50] sm:$0xff] }
  0x10   :  { %74 = vmatpush.msra.mxu0 %v61_v13  ;;  %v872_v23 = vld [vmem:[%s1110_s3 + $0x58] sm:$0xff]  ;;  %v882_v25 = vld [vmem:[%s1110_s3 + $0x48] sm:$0xff]  ;;  %v54_v26 = vld [vmem:[%s1108_s1 + $0x10] sm:$0xff] }
  0x11   :  { %677 = vmatpush.msra.mxu2 %v61_v13  ;;  %678 = vmatpush.msra.mxu3 %v61_v13  ;;  %v53_v27 = vld [vmem:[%s1108_s1 + $0x8] sm:$0xff]  ;;  %v52_v28 = vld [vmem:[%s1108_s1] sm:$0xff]  ;;  %v43_v30 = vld [vmem:[%s1107_s0 + $0x38] sm:$0xff] }
  0x12   :  { %75 = vmatpush.msra.mxu0 %v60_v14  ;;  %v36_v29 = vld [vmem:[%s1107_s0] sm:$0xff]  ;;  %v51_v31 = vld [vmem:[%s1107_s0 + $0x78] sm:$0xff]  ;;  %v908_v32 = vld [vmem:[%s1110_s3 + $0x70] sm:$0xff] }
  0x13   :  { %679 = vmatpush.msra.mxu2 %v60_v14  ;;  %680 = vmatpush.msra.mxu3 %v60_v14  ;;  %v913_v33 = vld [vmem:[%s1110_s3 + $0x68] sm:$0xff]  ;;  %v918_v34 = vld [vmem:[%s1110_s3 + $0x60] sm:$0xff]  ;;  %v932_v37 = vld [vmem:[%s1110_s3 + $0x78] sm:$0xff] }
  0x14   :  { %76 = vmatpush.msra.mxu0 %v59_v15  ;;  %v37_v35 = vld [vmem:[%s1107_s0 + $0x8] sm:$0xff]  ;;  %v44_v36 = vld [vmem:[%s1107_s0 + $0x40] sm:$0xff]  ;;  %v38_v39 = vld [vmem:[%s1107_s0 + $0x10] sm:$0xff] }
  0x15   :  { %681 = vmatpush.msra.mxu2 %v59_v15  ;;  %682 = vmatpush.msra.mxu3 %v59_v15  ;;  %v45_v40 = vld [vmem:[%s1107_s0 + $0x48] sm:$0xff]  ;;  %v39_v41 = vld [vmem:[%s1107_s0 + $0x18] sm:$0xff]  ;;  %v46_v42 = vld [vmem:[%s1107_s0 + $0x50] sm:$0xff] }
  0x16   :  { %175 = vperm.xlu2 %708, %v842_v16   ;;  %170 = vperm.xlu1 %707, %v847_v17   ;;  %v40_v43 = vld [vmem:[%s1107_s0 + $0x20] sm:$0xff]  ;;  %v47_v44 = vld [vmem:[%s1107_s0 + $0x58] sm:$0xff]  ;;  %v41_v45 = vld [vmem:[%s1107_s0 + $0x28] sm:$0xff] }
  0x17   :  { %165 = vperm.xlu0 %706, %v852_v18   ;;  %77 = vmatpush.msra.mxu0 %v58_v19  ;;  %v48_v46 = vld [vmem:[%s1107_s0 + $0x60] sm:$0xff]  ;;  %v42_v47 = vld [vmem:[%s1107_s0 + $0x30] sm:$0xff]  ;;  %v49_v48 = vld [vmem:[%s1107_s0 + $0x68] sm:$0xff] }
  0x18   :  { %683 = vmatpush.msra.mxu2 %v58_v19  ;;  %684 = vmatpush.msra.mxu3 %v58_v19  ;;  %v50_v49 = vld [vmem:[%s1107_s0 + $0x70] sm:$0xff]  ;;  %v35_v57 = vld [vmem:[%s1109_s2 + $0x8] sm:$0xff]  ;;  %v34_v60 = vld [vmem:[%s1109_s2] sm:$0xff]  ;;  %s748_s2 = smov [#allocation2]  }
  0x19   :  { %78 = vmatpush.msra.mxu0 %v57_v20  ;;  %388 = vmatpush.msra.mxu1 %v35_v57  ;;  %s635_s7 = sshll.u32 %s748_s2, 4  ;;  %s636_s7 = int_to_ptr.vmem [resolvable:$true] %s635_s7 }
  0x1a   :  { %685 = vmatpush.msra.mxu2 %v57_v20  ;;  %686 = vmatpush.msra.mxu3 %v57_v20 }
  0x1b   :  { %79 = vmatpush.msra.mxu0 %v56_v21  ;;  %389 = vmatpush.msra.mxu1 %v34_v60 }
  0x1c   :  { %687 = vmatpush.msra.mxu2 %v56_v21  ;;  %688 = vmatpush.msra.mxu3 %v56_v21 }
  0x1d   :  { %80 = vmatpush.msra.mxu0 %v55_v22 }
  0x1e   :  { %689 = vmatpush.msra.mxu2 %v55_v22  ;;  %690 = vmatpush.msra.mxu3 %v55_v22 }
  0x1f   :  { %190 = vperm.xlu2 %708, %v872_v23   ;;  %185 = vperm.xlu1 %707, %v877_v24  }
  0x20   :  { %180 = vperm.xlu0 %706, %v882_v25   ;;  %81 = vmatpush.msra.mxu0 %v54_v26 }
  0x21   :  { %691 = vmatpush.msra.mxu2 %v54_v26  ;;  %692 = vmatpush.msra.mxu3 %v54_v26 }
  0x22   :  { %82 = vmatpush.msra.mxu0 %v53_v27 }
  0x23   :  { %693 = vmatpush.msra.mxu2 %v53_v27  ;;  %694 = vmatpush.msra.mxu3 %v53_v27 }
  0x24   :  { %83 = vmatpush.msra.mxu0 %v52_v28 }
  0x25   :  { %695 = vmatpush.msra.mxu2 %v52_v28  ;;  %696 = vmatpush.msra.mxu3 %v52_v28 }
  0x26   :  { %84 = vmatmul.f32.vlgmr.msra.gmra.mxu0 %v36_v29  ;;  %105 = vmatmul.f32.vlgmr.msra.gmra.mxu2 %v43_v30 }
  0x27   :  { %129 = vmatmul.f32.vlgmr.msra.gmra.mxu3 %v51_v31  ;;  %205 = vperm.xlu2 %708, %v908_v32  }
  0x28   :  { %200 = vperm.xlu1 %707, %v913_v33   ;;  %195 = vperm.xlu0 %706, %v918_v34  }
  0x29   :  { %697 = vmatpush.msrb.mxu3 %v35_v57 }
  0x2b   :  { %698 = vmatpush.msrb.mxu3 %v34_v60 }
  0x2e   :  { %87 = vmatmul.f32.gmra.mxu0 %v37_v35  ;;  %108 = vmatmul.f32.gmra.mxu2 %v44_v36 }
  0x2f   :  { %710 = vset.pattern.permute.xlu2 %v745_v38 }
  0x30   :  { %709 = vset.pattern.permute.xlu1 %v745_v38  ;;  %210 = vperm.xlu0 %706, %v932_v37  }
  0x31   :  { %234 = vperm.xlu2 %710, %v822_v11   ;;  %230 = vperm.xlu1 %709, %v792_v4  }
  0x36   :  { %90 = vmatmul.f32.gmra.mxu0 %v38_v39  ;;  %111 = vmatmul.f32.gmra.mxu2 %v45_v40 }
  0x38   :  { %711 = vset.pattern.permute.xlu0 %v745_v38 }
  0x39   :  { %246 = vperm.xlu2 %710, %v782_v2   ;;  %242 = vperm.xlu1 %709, %v817_v10  }
  0x3a   :  { %238 = vperm.xlu0 %711, %v787_v3  }
  0x3e   :  { %93 = vmatmul.f32.gmra.mxu0 %v39_v41  ;;  %114 = vmatmul.f32.gmra.mxu2 %v46_v42 }
  0x41   :  { %254 = vperm.xlu2 %710, %v852_v18   ;;  %250 = vperm.xlu1 %709, %v812_v9  }
  0x42   :  { %258 = vperm.xlu0 %711, %v847_v17  }
  0x46   :  { %96 = vmatmul.f32.gmra.mxu0 %v40_v43  ;;  %117 = vmatmul.f32.gmra.mxu2 %v47_v44 }
  0x49   :  { %266 = vperm.xlu2 %710, %v882_v25   ;;  %262 = vperm.xlu1 %709, %v842_v16  }
  0x4a   :  { %270 = vperm.xlu0 %711, %v877_v24  }
  0x4e   :  { %99 = vmatmul.f32.gmra.mxu0 %v41_v45  ;;  %120 = vmatmul.f32.gmra.mxu2 %v48_v46 }
  0x51   :  { %278 = vperm.xlu2 %710, %v918_v34   ;;  %274 = vperm.xlu1 %709, %v872_v23  }
  0x52   :  { %282 = vperm.xlu0 %711, %v913_v33  }
  0x56   :  { %102 = vmatmul.f32.gmra.mxu0 %v42_v47  ;;  %123 = vmatmul.f32.gmra.mxu2 %v49_v48 }
  0x59   :  { %290 = vperm.xlu2 %710, %v932_v37   ;;  %286 = vperm.xlu1 %709, %v908_v32  }
  0x5a   :  { %712 = vset.pattern.permute.xlu0 %v746_v50 }
  0x5b   :  { %440 = vperm.xlu0 %712, %v792_v4  }
  0x5e   :  { %126 = vmatmul.f32.gmra.mxu2 %v50_v49  ;;  %v993_v53 = vpop.permute.xlu2 %155 }
  0x61   :  { %713 = vset.pattern.permute.xlu1 %v746_v50  ;;  %714 = vset.pattern.permute.xlu2 %v746_v50 }
  0x62   :  { %444 = vperm.xlu1 %713, %v822_v11   ;;  %448 = vperm.xlu2 %714, %v787_v3  }
  0x63   :  { %460 = vperm.xlu0 %712, %v812_v9  }
  0x67   :  { %v1000_v56 = vpop.permute.xlu2 %160 }
  0x6a   :  { %452 = vperm.xlu1 %713, %v817_v10   ;;  %456 = vperm.xlu2 %714, %v782_v2  }
  0x6b   :  { %472 = vperm.xlu0 %712, %v842_v16  }
  0x70   :  { %v1016_v61 = vpop.permute.xlu2 %175 }
  0x72   :  { %464 = vperm.xlu1 %713, %v852_v18   ;;  %468 = vperm.xlu2 %714, %v847_v17  }
  0x73   :  { %484 = vperm.xlu0 %712, %v872_v23  }
  0x76   :  { %v146_v51 = vpop.permute.xlu1 %145 }
  0x77   :  { %v136_v52 = vpop.permute.xlu0 %135 }
  0x79   :  { %v1020_v0 = vpop.permute.xlu2 %190 }
  0x7a   :  { %476 = vperm.xlu1 %713, %v882_v25   ;;  %480 = vperm.xlu2 %714, %v877_v24  }
  0x7b   :  { %496 = vperm.xlu0 %712, %v908_v32  }
  0x7f   :  { %v998_v54 = vpop.permute.xlu1 %150 }
  0x80   :  { %v141_v55 = vpop.permute.xlu0 %140 }
  0x81   :  { %v1028_v7 = vpop.permute.xlu2 %205 }
  0x82   :  { %488 = vperm.xlu1 %713, %v918_v34   ;;  %492 = vperm.xlu2 %714, %v913_v33  }
  0x83   :  { %716 = vset.pattern.permute.xlu0 %v747_v6 }
  0x84   :  { %524 = vperm.xlu0 %716, %v822_v11  }
  0x88   :  { %v1008_v58 = vpop.permute.xlu1 %170 }
  0x89   :  { %v1010_v59 = vpop.permute.xlu0 %165 }
  0x8a   :  { %500 = vperm.xlu1 %713, %v932_v37   ;;  %715 = vset.pattern.permute.xlu2 %v747_v6 }
  0x8b   :  { %520 = vperm.xlu2 %715, %v792_v4  }
  0x8c   :  { %544 = vperm.xlu0 %716, %v852_v18  }
  0x91   :  { %v186_v62 = vpop.permute.xlu1 %185 }
  0x92   :  { %v1018_v63 = vpop.permute.xlu0 %180  ;;  %717 = vset.pattern.permute.xlu1 %v747_v6 }
  0x93   :  { %528 = vperm.xlu1 %717, %v787_v3   ;;  %532 = vperm.xlu2 %715, %v817_v10   ;;  %v235_v3 = vpop.permute.xlu2 %234 }
  0x94   :  { %556 = vperm.xlu0 %716, %v882_v25  }
  0x9a   :  { %v1022_v1 = vpop.permute.xlu1 %200  ;;  %v1024_v5 = vpop.permute.xlu0 %195 }
  0x9b   :  { %536 = vperm.xlu1 %717, %v782_v2   ;;  %540 = vperm.xlu2 %715, %v812_v9   ;;  %v247_v10 = vpop.permute.xlu2 %246 }
  0x9c   :  { %568 = vperm.xlu0 %716, %v918_v34  }
  0xa2   :  { %v1031_v14 = vpop.permute.xlu0 %210 }
  0xa3   :  { %v85_v8 = vpop.f32.mrf.mxu0  ;;  %v231_v13 = vpop.permute.xlu1 %230  ;;  %548 = vperm.xlu1 %717, %v847_v17   ;;  %552 = vperm.xlu2 %715, %v842_v16  }
  0xa4   :  { %v213_v12 = vmul.f32 %v136_v52, %v85_v8  ;;  %v255_v38 = vpop.permute.xlu2 %254  ;;  %580 = vperm.xlu0 %716, %v932_v37  }
  0xa6   :  { %v293_v15 = vadd.f32 %v231_v13, %v213_v12 }
  0xa8   :  { %v309_v19 = vmax.f32 %v293_v15, 0.0 }
  0xa9   :  { %v1035_v11 = vpop.f32.mrf.mxu2 }
  0xaa   :  { %649 = vmatmul.msk.f32.vlgmr.msra.gmra.mxu1 %vm325_vm0, %v309_v19  ;;  %v220_v12 = vmul.f32 %v1008_v58, %v1035_v11 }
  0xab   :  { %v88_v4 = vpop.f32.mrf.mxu0  ;;  %v243_v21 = vpop.permute.xlu1 %242  ;;  %560 = vperm.xlu1 %717, %v877_v24   ;;  %564 = vperm.xlu2 %715, %v872_v23  }
  0xac   :  { %v214_v20 = vmul.f32 %v141_v55, %v88_v4  ;;  %v239_v26 = vpop.permute.xlu0 %238 }
  0xae   :  { %v294_v22 = vadd.f32 %v235_v3, %v214_v20 }
  0xb0   :  { %v310_v27 = vmax.f32 %v294_v22, 0.0  ;;  %v130_v22 = vpop.f32.mrf.mxu3 }
  0xb1   :  { %v1041_v2 = vpop.f32.mrf.mxu2 }
  0xb2   :  { %650 = vmatmul.msk.f32.gmra.mxu1 %vm325_vm0, %v310_v27  ;;  %v221_v20 = vmul.f32 %v1016_v61, %v1041_v2 }
  0xb3   :  { %v91_v18 = vpop.f32.mrf.mxu0  ;;  %v251_v30 = vpop.permute.xlu1 %250  ;;  %572 = vperm.xlu1 %717, %v913_v33   ;;  %576 = vperm.xlu2 %715, %v908_v32  }
  0xb4   :  { %v215_v28 = vmul.f32 %v146_v51, %v91_v18  ;;  %v259_v35 = vpop.permute.xlu0 %258  ;;  %v267_v33 = vpop.permute.xlu2 %266  ;;  %v228_v18 = vmul.f32 %v1031_v14, %v130_v22 }
  0xb5   :  { %v300_v15 = vadd.f32 %v259_v35, %v220_v12 }
  0xb6   :  { %v295_v29 = vadd.f32 %v239_v26, %v215_v28 }
  0xb7   :  { %v316_v4 = vmax.f32 %v300_v15, 0.0 }
  0xb8   :  { %v311_v31 = vmax.f32 %v295_v29, 0.0 }
  0xb9   :  { %v1047_v17 = vpop.f32.mrf.mxu2 }
  0xba   :  { %651 = vmatmul.msk.f32.gmra.mxu1 %vm325_vm0, %v311_v31  ;;  %v222_v28 = vmul.f32 %v1018_v63, %v1047_v17 }
  0xbb   :  { %v94_v25 = vpop.f32.mrf.mxu0  ;;  %v263_v24 = vpop.permute.xlu1 %262 }
  0xbc   :  { %v216_v9 = vmul.f32 %v998_v54, %v94_v25  ;;  %v271_v41 = vpop.permute.xlu0 %270  ;;  %v279_v57 = vpop.permute.xlu2 %278  ;;  %v301_v11 = vadd.f32 %v263_v24, %v221_v20  ;;  %v302_v61 = vadd.f32 %v267_v33, %v222_v28 }
  0xbe   :  { %v296_v36 = vadd.f32 %v243_v21, %v216_v9  ;;  %v318_v2 = vmax.f32 %v302_v61, 0.0 }
  0xc0   :  { %v312_v39 = vmax.f32 %v296_v36, 0.0 }
  0xc1   :  { %v115_v40 = vpop.f32.mrf.mxu2 }
  0xc2   :  { %v223_v34 = vmul.f32 %v186_v62, %v115_v40  ;;  %652 = vmatmul.msk.f32.gmra.mxu1 %vm325_vm0, %v312_v39 }
  0xc3   :  { %v97_v42 = vpop.f32.mrf.mxu0  ;;  %v275_v48 = vpop.permute.xlu1 %274 }
  0xc4   :  { %v303_v16 = vadd.f32 %v271_v41, %v223_v34  ;;  %v217_v43 = vmul.f32 %v993_v53, %v97_v42  ;;  %v291_v27 = vpop.permute.xlu2 %290 }
  0xc5   :  { %v308_v29 = vadd.f32 %v291_v27, %v228_v18 }
  0xc6   :  { %v319_v44 = vmax.f32 %v303_v16, 0.0  ;;  %v297_v45 = vadd.f32 %v247_v10, %v217_v43  ;;  %v317_v10 = vmax.f32 %v301_v11, 0.0 }
  0xc8   :  { %v313_v46 = vmax.f32 %v297_v45, 0.0  ;;  %659 = vmatmul.msk.f32.vlgmr.msrb.gmra.mxu3 %vm325_vm0, %v319_v44 }
  0xc9   :  { %v118_v47 = vpop.f32.mrf.mxu2 }
  0xca   :  { %v224_v37 = vmul.f32 %v1020_v0, %v118_v47  ;;  %653 = vmatmul.msk.f32.gmra.mxu1 %vm325_vm0, %v313_v46 }
  0xcb   :  { %v100_v23 = vpop.f32.mrf.mxu0  ;;  %v287_v58 = vpop.permute.xlu1 %286 }
  0xcc   :  { %v304_v49 = vadd.f32 %v275_v48, %v224_v37  ;;  %v218_v50 = vmul.f32 %v1000_v56, %v100_v23  ;;  %v449_v31 = vpop.permute.xlu2 %448 }
  0xce   :  { %v320_v51 = vmax.f32 %v304_v49, 0.0  ;;  %v298_v52 = vadd.f32 %v251_v30, %v218_v50 }
  0xd0   :  { %v314_v53 = vmax.f32 %v298_v52, 0.0  ;;  %660 = vmatmul.msk.f32.gmra.mxu3 %vm325_vm0, %v320_v51 }
  0xd1   :  { %v121_v54 = vpop.f32.mrf.mxu2 }
  0xd2   :  { %v225_v55 = vmul.f32 %v1024_v5, %v121_v54  ;;  %654 = vmatmul.msk.f32.gmra.mxu1 %vm325_vm0, %v314_v53  ;;  %v283_v5 = vpop.permute.xlu0 %282 }
  0xd3   :  { %v103_v60 = vpop.f32.mrf.mxu0 }
  0xd4   :  { %v305_v62 = vadd.f32 %v279_v57, %v225_v55  ;;  %v219_v32 = vmul.f32 %v1010_v59, %v103_v60  ;;  %v445_v30 = vpop.permute.xlu1 %444  ;;  %v457_v25 = vpop.permute.xlu2 %456 }
  0xd6   :  { %v321_v0 = vmax.f32 %v305_v62, 0.0  ;;  %v299_v6 = vadd.f32 %v255_v38, %v219_v32 }
  0xd8   :  { %v315_v8 = vmax.f32 %v299_v6, 0.0  ;;  %661 = vmatmul.msk.f32.gmra.mxu3 %vm325_vm0, %v321_v0 }
  0xd9   :  { %v124_v56 = vpop.f32.mrf.mxu2 }
  0xda   :  { %v226_v13 = vmul.f32 %v1022_v1, %v124_v56  ;;  %655 = vmatmul.msk.f32.gmra.mxu1 %vm325_vm0, %v315_v8  ;;  %v441_v14 = vpop.permute.xlu0 %440 }
  0xdc   :  { %v306_v19 = vadd.f32 %v283_v5, %v226_v13  ;;  %v453_v35 = vpop.permute.xlu1 %452  ;;  %v1085_v17 = vpop.permute.xlu2 %468 }
  0xde   :  { %v322_v3 = vmax.f32 %v306_v19, 0.0 }
  0xe0   :  { %662 = vmatmul.msk.f32.gmra.mxu3 %vm325_vm0, %v322_v3 }
  0xe1   :  { %v127_v59 = vpop.f32.mrf.mxu2 }
  0xe2   :  { %v227_v21 = vmul.f32 %v1028_v7, %v127_v59  ;;  %656 = vmatmul.msk.f32.gmra.mxu1 %vm325_vm0, %v316_v4  ;;  %v324_v7 = vmax.f32 %v308_v29, 0.0  ;;  %v461_v63 = vpop.permute.xlu0 %460 }
  0xe4   :  { %v307_v1 = vadd.f32 %v287_v58, %v227_v21  ;;  %v1083_v9 = vpop.permute.xlu1 %464  ;;  %v481_v39 = vpop.permute.xlu2 %480 }
  0xe6   :  { %v323_v26 = vmax.f32 %v307_v1, 0.0 }
  0xe8   :  { %663 = vmatmul.msk.f32.gmra.mxu3 %vm325_vm0, %v323_v26 }
  0xea   :  { %657 = vmatmul.msk.f32.gmra.mxu1 %vm325_vm0, %v317_v10  ;;  %v1089_v38 = vpop.permute.xlu0 %472 }
  0xec   :  { %v1087_v36 = vpop.permute.xlu1 %476  ;;  %v1091_v34 = vpop.permute.xlu2 %492 }
  0xf0   :  { %664 = vmatmul.msk.f32.gmra.mxu3 %vm325_vm0, %v324_v7 }
  0xf2   :  { %658 = vmatmul.msk.f32.gmra.mxu1 %vm325_vm0, %v318_v2  ;;  %v485_v40 = vpop.permute.xlu0 %484 }
  0xf4   :  { %v489_v24 = vpop.permute.xlu1 %488  ;;  %v521_v44 = vpop.permute.xlu2 %520 }
  0xfa   :  { %v1095_v42 = vpop.permute.xlu0 %496 }
  0xfc   :  { %v1093_v41 = vpop.permute.xlu1 %500  ;;  %v533_v50 = vpop.permute.xlu2 %532 }
 0x102   :  { %v525_v37 = vpop.permute.xlu0 %524 }
 0x104   :  { %v541_v60 = vpop.permute.xlu2 %540 }
 0x105   :  { %v529_v33 = vpop.permute.xlu1 %528 }
 0x10a   :  { %v545_v12 = vpop.permute.xlu0 %544 }
 0x10c   :  { %v553_v13 = vpop.permute.xlu2 %552 }
 0x10d   :  { %v537_v52 = vpop.permute.xlu1 %536 }
 0x112   :  { %v557_v1 = vpop.permute.xlu0 %556 }
 0x114   :  { %v565_v18 = vpop.permute.xlu2 %564 }
 0x115   :  { %v549_v32 = vpop.permute.xlu1 %548 }
 0x11d   :  { %v561_v19 = vpop.permute.xlu1 %560 }
 0x127   :  { %v391_v16 = vpop.f32.mrf.mxu1 }
 0x128   :  { %v503_v43 = vmul.f32 %v441_v14, %v391_v16 }
 0x12a   :  { %v583_v45 = vadd.f32 %v521_v44, %v503_v43 }
 0x12c   :  { %v599_v46 = vmax.f32 %v583_v45, 0.0  ;;  %v573_v45 = vpop.permute.xlu1 %572 }
 0x12e   :  { %615 = vst [vmem:[#allocation2] sm:$0xff] %v599_v46 }
 0x12f   :  { %v394_v47 = vpop.f32.mrf.mxu1 }
 0x130   :  { %v504_v48 = vmul.f32 %v445_v30, %v394_v47 }
 0x132   :  { %v584_v23 = vadd.f32 %v525_v37, %v504_v48 }
 0x134   :  { %v600_v49 = vmax.f32 %v584_v23, 0.0 }
 0x136   :  { %616 = vst [vmem:[#allocation2 + $0x8] sm:$0xff] %v600_v49 }
 0x137   :  { %v397_v51 = vpop.f32.mrf.mxu1 }
 0x138   :  { %v505_v53 = vmul.f32 %v449_v31, %v397_v51 }
 0x13a   :  { %v585_v54 = vadd.f32 %v529_v33, %v505_v53 }
 0x13c   :  { %v601_v55 = vmax.f32 %v585_v54, 0.0 }
 0x13e   :  { %617 = vst [vmem:[#allocation2 + $0x10] sm:$0xff] %v601_v55 }
 0x13f   :  { %v400_v57 = vpop.f32.mrf.mxu1 }
 0x140   :  { %v506_v62 = vmul.f32 %v453_v35, %v400_v57  ;;  %v569_v35 = vpop.permute.xlu0 %568 }
 0x142   :  { %v586_v0 = vadd.f32 %v533_v50, %v506_v62 }
 0x144   :  { %v602_v6 = vmax.f32 %v586_v0, 0.0 }
 0x146   :  { %618 = vst [vmem:[#allocation2 + $0x18] sm:$0xff] %v602_v6 }
 0x147   :  { %v403_v8 = vpop.f32.mrf.mxu1 }
 0x148   :  { %v507_v56 = vmul.f32 %v457_v25, %v403_v8 }
 0x14a   :  { %v587_v5 = vadd.f32 %v537_v52, %v507_v56 }
 0x14b   :  { %v421_v15 = vpop.f32.mrf.mxu3 }
 0x14c   :  { %v603_v3 = vmax.f32 %v587_v5, 0.0  ;;  %v513_v4 = vmul.f32 %v481_v39, %v421_v15 }
 0x14e   :  { %619 = vst [vmem:[#allocation2 + $0x20] sm:$0xff] %v603_v3  ;;  %v593_v59 = vadd.f32 %v561_v19, %v513_v4 }
 0x14f   :  { %v406_v20 = vpop.f32.mrf.mxu1 }
 0x150   :  { %v609_v21 = vmax.f32 %v593_v59, 0.0  ;;  %v508_v58 = vmul.f32 %v461_v63, %v406_v20 }
 0x152   :  { %625 = vst [vmem:[#allocation2 + $0x50] sm:$0xff] %v609_v21  ;;  %v588_v11 = vadd.f32 %v541_v60, %v508_v58 }
 0x153   :  { %v424_v22 = vpop.f32.mrf.mxu3 }
 0x154   :  { %v604_v26 = vmax.f32 %v588_v11, 0.0  ;;  %v514_v27 = vmul.f32 %v485_v40, %v424_v22 }
 0x156   :  { %620 = vst [vmem:[#allocation2 + $0x28] sm:$0xff] %v604_v26  ;;  %v594_v28 = vadd.f32 %v565_v18, %v514_v27 }
 0x157   :  { %v409_v10 = vpop.f32.mrf.mxu1 }
 0x158   :  { %v610_v29 = vmax.f32 %v594_v28, 0.0  ;;  %v509_v61 = vmul.f32 %v1083_v9, %v409_v10 }
 0x15a   :  { %626 = vst [vmem:[#allocation2 + $0x58] sm:$0xff] %v610_v29  ;;  %v589_v7 = vadd.f32 %v545_v12, %v509_v61 }
 0x15b   :  { %v427_v2 = vpop.f32.mrf.mxu3 }
 0x15c   :  { %v605_v30 = vmax.f32 %v589_v7, 0.0  ;;  %v515_v31 = vmul.f32 %v489_v24, %v427_v2 }
 0x15e   :  { %621 = vst [vmem:[#allocation2 + $0x30] sm:$0xff] %v605_v30  ;;  %v595_v14 = vadd.f32 %v569_v35, %v515_v31 }
 0x15f   :  { %v412_v25 = vpop.f32.mrf.mxu1 }
 0x160   :  { %v611_v63 = vmax.f32 %v595_v14, 0.0  ;;  %v510_v39 = vmul.f32 %v1085_v17, %v412_v25  ;;  %v577_v17 = vpop.permute.xlu2 %576 }
 0x162   :  { %627 = vst [vmem:[#allocation2 + $0x60] sm:$0xff] %v611_v63  ;;  %v590_v40 = vadd.f32 %v549_v32, %v510_v39 }
 0x163   :  { %v430_v16 = vpop.f32.mrf.mxu3 }
 0x164   :  { %v606_v43 = vmax.f32 %v590_v40, 0.0  ;;  %v516_v44 = vmul.f32 %v1091_v34, %v430_v16 }
 0x166   :  { %622 = vst [vmem:[#allocation2 + $0x38] sm:$0xff] %v606_v43  ;;  %v596_v9 = vadd.f32 %v573_v45, %v516_v44 }
 0x167   :  { %v415_v46 = vpop.f32.mrf.mxu1 }
 0x168   :  { %v612_v33 = vmax.f32 %v596_v9, 0.0  ;;  %v511_v24 = vmul.f32 %v1089_v38, %v415_v46  ;;  %v581_v38 = vpop.permute.xlu0 %580 }
 0x16a   :  { %628 = vst [vmem:[#allocation2 + $0x68] sm:$0xff] %v612_v33  ;;  %v591_v47 = vadd.f32 %v553_v13, %v511_v24 }
 0x16b   :  { %v433_v37 = vpop.f32.mrf.mxu3 }
 0x16c   :  { %v607_v48 = vmax.f32 %v591_v47, 0.0  ;;  %v517_v23 = vmul.f32 %v1095_v42, %v433_v37 }
 0x16e   :  { %623 = vst [vmem:[#allocation2 + $0x40] sm:$0xff] %v607_v48  ;;  %v597_v49 = vadd.f32 %v577_v17, %v517_v23 }
 0x16f   :  { %v418_v50 = vpop.f32.mrf.mxu1 }
 0x170   :  { %v613_v51 = vmax.f32 %v597_v49, 0.0  ;;  %v512_v34 = vmul.f32 %v1087_v36, %v418_v50 }
 0x172   :  { %629 = vst [vmem:[#allocation2 + $0x70] sm:$0xff] %v613_v51  ;;  %v592_v52 = vadd.f32 %v557_v1, %v512_v34 }
 0x173   :  { %v436_v53 = vpop.f32.mrf.mxu3 }
 0x174   :  { %v608_v54 = vmax.f32 %v592_v52, 0.0  ;;  %v518_v55 = vmul.f32 %v1093_v41, %v436_v53 }
 0x176   :  { %624 = vst [vmem:[#allocation2 + $0x48] sm:$0xff] %v608_v54  ;;  %v598_v42 = vadd.f32 %v581_v38, %v518_v55 }
 0x178   :  { %v614_v57 = vmax.f32 %v598_v42, 0.0 }
 0x17a   :  { %630 = vst [vmem:[#allocation2 + $0x78] sm:$0xff] %v614_v57 }
 0x17b   :  { %643 = dma.vmem_to_hbm [thread:$0]  %s636_s7, 2048, %s638_s10, [#allocation3], %s749_s11, %s749_s11, %s750_s12  }
 0x17c   :  { %742 = dma.done.wait [#allocation3], 2048  }
 0x17d   :  { %743 = vsyncadd [#allocation3], 4294965248 }
 0x17e   :  { %648 = vsyncpa [#allocation3], 1 }

</bundles_post_ra>
